<compile_context>
chip_gen: v7x
topology: tpu7x:2x2x1
jax: 0.10.0
libtpu: 0.0.40
codegen_flags: <defaults>
</compile_context>

<pallas_src>
import functools

import jax
import jax.numpy as jnp
from jax.experimental import pallas as pl
from jax.experimental.pallas import tpu as pltpu


def _round_up(x, m):
    return (x + m - 1) // m * m


def _tpu_vmem_and_cores():
    """(VMEM capacity per TensorCore, TensorCores per chip) with safe fallback."""
    try:
        cap = int(pltpu.get_tpu_info().vmem_capacity_bytes)
        # 64 MiB / TC parts (v7x) have 2 TensorCores per chip; 128 MiB parts have 1.
        return cap, (2 if cap <= (64 << 20) else 1)
    except Exception:  # not a TPU backend / API shape changed: be conservative.
        return 64 << 20, 1


# ---------------------------------------------------------------------------
# Fused single-pass kernel: whole (R, HW) image block resident in VMEM.
# Works for both the plain layout (R == C) and the sublane-packed layout
# (R == B*C with block-diagonal gate weights).
# ---------------------------------------------------------------------------
def _scse_fused_kernel(x_ref, wsq_ref, wex_ref, ws_ref, o_ref, *, inv_hw):
    x = x_ref[0].astype(jnp.float32)                          # (R, HW)

    # cSE gate: global average pool -> squeeze -> ReLU -> excite -> sigmoid.
    # Last block dim equals the true HW, so the sum is exact (no padding).
    z = jnp.sum(x, axis=1, keepdims=True) * inv_hw            # (R, 1)
    z2 = jnp.maximum(
        jnp.dot(wsq_ref[...].astype(jnp.float32), z,
                preferred_element_type=jnp.float32), 0.0)
    s = jax.nn.sigmoid(
        jnp.dot(wex_ref[...].astype(jnp.float32), z2,
                preferred_element_type=jnp.float32))          # (R, 1)

    # sSE gate: 1x1 conv over channels -> sigmoid (MXU dot, no sublane reduce).
    # Unpacked: ws is (1, C) -> q (1, HW) broadcasts over rows.
    # Packed:   ws is (R, R) row-replicated block-diag -> q (R, HW) directly.
    q = jax.nn.sigmoid(
        jnp.dot(ws_ref[...].astype(jnp.float32), x,
                preferred_element_type=jnp.float32))

    # Fused combine: x*s + x*q == x * (s + q); single store per vreg.
    o_ref[0] = (x * (s + q)).astype(o_ref.dtype)


# ---------------------------------------------------------------------------
# Tiled path, pass 1: pooled-mean accumulation over HW tiles + cSE gate.
# The ragged final tile (HW % t_hw != 0) is masked so the pool stays exact.
# ---------------------------------------------------------------------------
def _pool_gate_kernel(x_ref, wsq_ref, wex_ref, gate_ref, acc_ref,
                      *, inv_hw, hw, t_hw):
    t = pl.program_id(1)

    @pl.when(t == 0)
    def _():
        acc_ref[...] = jnp.zeros_like(acc_ref)

    x = x_ref[0].astype(jnp.float32)                          # (R, t_hw)
    if hw % t_hw != 0:  # static: ragged last tile; OOB lanes read garbage.
        lane = jax.lax.broadcasted_iota(jnp.int32, x.shape, 1)
        x = jnp.where(t * t_hw + lane < hw, x, 0.0)
    acc_ref[...] += jnp.sum(x, axis=1, keepdims=True)         # (R, 1)

    @pl.when(t == pl.num_programs(1) - 1)
    def _():
        z = acc_ref[...] * inv_hw                             # (R, 1)
        z2 = jnp.maximum(
            jnp.dot(wsq_ref[...].astype(jnp.float32), z,
                    preferred_element_type=jnp.float32), 0.0)
        gate_ref[0] = jax.nn.sigmoid(
            jnp.dot(wex_ref[...].astype(jnp.float32), z2,
                    preferred_element_type=jnp.float32))      # (R, 1)


# ---------------------------------------------------------------------------
# Tiled path, pass 2: mem-bound elementwise apply over lane-dense HW tiles.
# Out-of-bounds lanes of the ragged final tile compute garbage that Pallas
# drops on write-back (lane-local math: no contamination of valid lanes).
# ---------------------------------------------------------------------------
def _apply_kernel(gate_ref, ws_ref, x_ref, o_ref):
    x = x_ref[0].astype(jnp.float32)                          # (R, t_hw)
    q = jax.nn.sigmoid(
        jnp.dot(ws_ref[...].astype(jnp.float32), x,
                preferred_element_type=jnp.float32))          # (1|R, t_hw)
    o_ref[0] = (x * (gate_ref[0] + q)).astype(o_ref.dtype)


# ---------------------------------------------------------------------------
# Wrapper
# ---------------------------------------------------------------------------
def scse_pallas(x_nchw, w_sq, w_ex, w_s, *,
                tile_hw=None, force_tiled=False, donate_x=False):
    """scSE forward.

    x_nchw : (N, C, H, W)
    w_sq   : (C//2, C)  Conv_Squeeze 1x1 kernel (squeezed)
    w_ex   : (C, C//2)  Conv_Excitation 1x1 kernel (squeezed)
    w_s    : (1, C)     sSE conv 1x1 kernel (squeezed)
    """
    N, C, H, W = x_nchw.shape
    HW = H * W
    dtype = x_nchw.dtype
    itemsize = jnp.dtype(dtype).itemsize
    inv_hw = 1.0 / float(HW)

    # --- sublane packing: pack B images per block when C under-fills sublanes.
    pack_target = 8 if itemsize >= 4 else 16
    B = 1
    if 2 <= C < pack_target and pack_target % C == 0 and N % (pack_target // C) == 0:
        B = pack_target // C
    G, R = N // B, B * C

    # Contiguous reshapes only (free): no pad, no slice, anywhere.
    x3 = x_nchw.reshape(G, R, HW)

    # Effective (possibly block-diagonal) gate weights, f32.
    w_sq32, w_ex32, w_s32 = (w.astype(jnp.float32) for w in (w_sq, w_ex, w_s))
    if B > 1:
        eye_b = jnp.eye(B, dtype=jnp.float32)
        wsq_eff = jnp.kron(eye_b, w_sq32)                               # (B*C//2, R)
        wex_eff = jnp.kron(eye_b, w_ex32)                               # (R, B*C//2)
        # Row-replicated block-diagonal sSE weight: one MXU dot yields the
        # per-image q already broadcast across that image's channel rows.
        ws_eff = jnp.kron(eye_b, jnp.ones((C, 1), jnp.float32) @ w_s32)  # (R, R)
    else:
        wsq_eff, wex_eff, ws_eff = w_sq32, w_ex32, w_s32

    # --- hardware-aware sizing -------------------------------------------
    cap, num_tc = _tpu_vmem_and_cores()

    # Fused-path footprint: double-buffered in+out blocks + ~3 f32 temporaries
    # (upcast x, broadcast (s+q), product) + slack.
    blk_bytes = R * HW * itemsize
    fused_need = 4 * blk_bytes + 3 * R * HW * 4 + (2 << 20)
    fused_ok = fused_need <= int(0.65 * cap)

    # HW tile for the tiled path: >= ~2 MiB (4 MiB on 128-MiB parts) per block.
    hw128 = _round_up(HW, 128)
    if tile_hw is None:
        target_blk = (2 << 20) if cap <= (64 << 20) else (4 << 20)
        t_hw = _round_up(max(128, target_blk // max(1, R * itemsize)), 128)
    else:
        t_hw = _round_up(max(1, tile_hw), 128)
    t_hw = min(t_hw, hw128)
    if t_hw >= HW:
        t_hw = HW                      # full-dim block: exempt from lane-128 rule
    n_hw = -(-HW // t_hw)

    use_fused = (not force_tiled) and fused_ok
    # v7x (2 TCs): with fewer image blocks than cores and a meaningful amount
    # of data, the 3-pass tiled path on 2 TCs beats the 2-pass fused on 1 TC.
    if use_fused and G < num_tc and n_hw >= 2 and blk_bytes * G >= (8 << 20):
        use_fused = False

    # ---------------- fused single-pass path ----------------
    if use_fused:
        vmem_lim = int(min(0.9 * cap, max(fused_need + (4 << 20), 32 << 20)))
        out3 = pl.pallas_call(
            functools.partial(_scse_fused_kernel, inv_hw=inv_hw),
            out_shape=jax.ShapeDtypeStruct((G, R, HW), dtype),
            grid_spec=pltpu.PrefetchScalarGridSpec(
                num_scalar_prefetch=0,
                grid=(G,),
                in_specs=[
                    pl.BlockSpec((1, R, HW), lambda g: (g, 0, 0)),
                    pl.BlockSpec(wsq_eff.shape, lambda g: (0, 0)),
                    pl.BlockSpec(wex_eff.shape, lambda g: (0, 0)),
                    pl.BlockSpec(ws_eff.shape, lambda g: (0, 0)),
                ],
                out_specs=pl.BlockSpec((1, R, HW), lambda g: (g, 0, 0)),
            ),
            compiler_params=pltpu.CompilerParams(
                dimension_semantics=("parallel",),
                vmem_limit_bytes=vmem_lim,
            ),
            input_output_aliases=({0: 0} if donate_x else {}),
        )(x3, wsq_eff, wex_eff, ws_eff)
        return out3.reshape(N, C, H, W)

    # ---------------- tiled two-pass path ----------------
    tile_bytes = R * t_hw * itemsize
    vmem_lim = int(min(0.9 * cap,
                       max(4 * tile_bytes + 3 * R * t_hw * 4 + (4 << 20),
                           32 << 20)))

    # Pass 1: pooled channel means + cSE gate -> s[G, R, 1] (f32).
    gate = pl.pallas_call(
        functools.partial(_pool_gate_kernel, inv_hw=inv_hw, hw=HW, t_hw=t_hw),
        out_shape=jax.ShapeDtypeStruct((G, R, 1), jnp.float32),
        grid_spec=pltpu.PrefetchScalarGridSpec(
            num_scalar_prefetch=0,
            grid=(G, n_hw),
            in_specs=[
                pl.BlockSpec((1, R, t_hw), lambda g, t: (g, 0, t)),
                pl.BlockSpec(wsq_eff.shape, lambda g, t: (0, 0)),
                pl.BlockSpec(wex_eff.shape, lambda g, t: (0, 0)),
            ],
            out_specs=pl.BlockSpec((1, R, 1), lambda g, t: (g, 0, 0)),
            scratch_shapes=[pltpu.VMEM((R, 1), jnp.float32)],
        ),
        compiler_params=pltpu.CompilerParams(
            dimension_semantics=("parallel", "arbitrary"),
            vmem_limit_bytes=vmem_lim,
        ),
    )(x3, wsq_eff, wex_eff)

    # Pass 2: elementwise apply; both grid axes parallel (v7x: 2 TensorCores).
    out3 = pl.pallas_call(
        _apply_kernel,
        out_shape=jax.ShapeDtypeStruct((G, R, HW), dtype),
        grid_spec=pltpu.PrefetchScalarGridSpec(
            num_scalar_prefetch=0,
            grid=(G, n_hw),
            in_specs=[
                pl.BlockSpec((1, R, 1), lambda g, t: (g, 0, 0)),
                pl.BlockSpec(ws_eff.shape, lambda g, t: (0, 0)),
                pl.BlockSpec((1, R, t_hw), lambda g, t: (g, 0, t)),
            ],
            out_specs=pl.BlockSpec((1, R, t_hw), lambda g, t: (g, 0, t)),
        ),
        compiler_params=pltpu.CompilerParams(
            dimension_semantics=("parallel", "parallel"),
            vmem_limit_bytes=vmem_lim,
        ),
        input_output_aliases=({2: 0} if donate_x else {}),
    )(gate, ws_eff, x3)

    return out3.reshape(N, C, H, W)


# ---------------------------------------------------------------------------
# Pure-JAX reference matching the PyTorch forward.
# ---------------------------------------------------------------------------
def scse_ref(x, w_sq, w_ex, w_s):
    hi = jax.lax.Precision.HIGHEST
    z = x.mean(axis=(2, 3))                                              # (N, C)
    z2 = jnp.maximum(jnp.matmul(z, w_sq.T, precision=hi), 0.0)           # (N, C//2)
    s = jax.nn.sigmoid(jnp.matmul(z2, w_ex.T, precision=hi))             # (N, C)
    c_out = x * s[:, :, None, None]
    q = jax.nn.sigmoid(jnp.einsum("nchw,c->nhw", x, w_s[0], precision=hi))
    s_out = x * q[:, None, :, :]
    return c_out + s_out


if __name__ == "__main__":
    key = jax.random.PRNGKey(0)

    def make(N, C, H, W, k):
        kx, k1, k2, k3 = jax.random.split(k, 4)
        x = jax.random.normal(kx, (N, C, H, W), dtype=jnp.float32)
        w_sq = jax.random.normal(k1, (C // 2, C), dtype=jnp.float32) * 0.5
        w_ex = jax.random.normal(k2, (C, C // 2), dtype=jnp.float32) * 0.5
        w_s = jax.random.normal(k3, (1, C), dtype=jnp.float32) * 0.5
        return x, w_sq, w_ex, w_s

    cases = [
        # primary shape: sublane-packed (B=2), fused single-pass path
        ((2, 4, 16, 16), {}),
        # packed tiled path, 2 full HW tiles
        ((2, 4, 16, 16), dict(force_tiled=True, tile_hw=128)),
        # packed tiled path with a ragged final HW tile (masked pool, clipped store)
        ((2, 4, 13, 13), dict(force_tiled=True, tile_hw=128)),
        # unpacked fused path with HW not a multiple of 128 (full-dim block, no pad)
        ((1, 16, 7, 7), {}),
    ]
    keys = jax.random.split(key, len(cases))
    for (shape, kw), k in zip(cases, keys):
        x, w_sq, w_ex, w_s = make(*shape, k)
        out = jax.block_until_ready(scse_pallas(x, w_sq, w_ex, w_s, **kw))
        exp = scse_ref(x, w_sq, w_ex, w_s)
        assert out.shape == x.shape, f"shape mismatch for {shape} {kw}"
        assert jnp.allclose(out, exp, atol=2e-5, rtol=2e-5), (
            f"value mismatch vs reference for {shape} {kw}")

    print("KERNEL_OK")
</pallas_src>

<mosaic_0001>
module attributes {stable_mosaic.version = 11 : i64} {
  func.func @_scse_fused_kernel(%arg0: i32, %arg1: memref<1x8x256xf32, #tpu.memory_space<vmem>>, %arg2: memref<4x8xf32, #tpu.memory_space<vmem>>, %arg3: memref<8x4xf32, #tpu.memory_space<vmem>>, %arg4: memref<8x8xf32, #tpu.memory_space<vmem>>, %arg5: memref<1x8x256xf32, #tpu.memory_space<vmem>>) attributes {dimension_semantics = [#tpu.dimension_semantics<parallel>], iteration_bounds = array<i64: 1>, scalar_prefetch = 0 : i64, scratch_operands = 0 : i64, tpu.core_type = #tpu.core_type<tc>, window_params = [{transform_indices = @transform_0, window_bounds = array<i64: 1, 8, 256>}, {pipeline_mode = #tpu.pipeline_mode<synchronous>, transform_indices = @transform_1, window_bounds = array<i64: 4, 8>}, {pipeline_mode = #tpu.pipeline_mode<synchronous>, transform_indices = @transform_2, window_bounds = array<i64: 8, 4>}, {pipeline_mode = #tpu.pipeline_mode<synchronous>, transform_indices = @transform_3, window_bounds = array<i64: 8, 8>}, {transform_indices = @transform_4, window_bounds = array<i64: 1, 8, 256>}]} {
    %c0 = arith.constant 0 : index
    %c0_0 = arith.constant 0 : index
    %c0_1 = arith.constant 0 : index
    %0 = vector.load %arg1[%c0, %c0_0, %c0_1] : memref<1x8x256xf32, #tpu.memory_space<vmem>>, vector<1x8x256xf32>
    %1 = vector.shape_cast %0 : vector<1x8x256xf32> to vector<8x256xf32>
    %cst = arith.constant dense<0.000000e+00> : vector<8xf32>
    %2 = vector.multi_reduction <add>, %1, %cst [1] : vector<8x256xf32> to vector<8xf32>
    %3 = vector.shape_cast %2 : vector<8xf32> to vector<8x1xf32>
    %cst_2 = arith.constant 3.906250e-03 : f32
    %4 = vector.broadcast %cst_2 : f32 to vector<8x1xf32>
    %5 = arith.mulf %3, %4 : vector<8x1xf32>
    %c0_3 = arith.constant 0 : index
    %c0_4 = arith.constant 0 : index
    %6 = vector.load %arg2[%c0_3, %c0_4] : memref<4x8xf32, #tpu.memory_space<vmem>>, vector<4x8xf32>
    %cst_5 = arith.constant dense<0.000000e+00> : vector<4x1xf32>
    %7 = tpu.matmul %6, %5, %cst_5 {dimension_numbers = #tpu.dot_dimension_numbers<[1], [0], [0], [1], [0, 0, 1, 1], [], []>} : vector<4x8xf32>, vector<8x1xf32>, vector<4x1xf32> -> vector<4x1xf32>
    %cst_6 = arith.constant 0.000000e+00 : f32
    %8 = vector.broadcast %cst_6 : f32 to vector<4x1xf32>
    %9 = arith.maximumf %7, %8 : vector<4x1xf32>
    %c0_7 = arith.constant 0 : index
    %c0_8 = arith.constant 0 : index
    %10 = vector.load %arg3[%c0_7, %c0_8] : memref<8x4xf32, #tpu.memory_space<vmem>>, vector<8x4xf32>
    %cst_9 = arith.constant dense<0.000000e+00> : vector<8x1xf32>
    %11 = tpu.matmul %10, %9, %cst_9 {dimension_numbers = #tpu.dot_dimension_numbers<[1], [0], [0], [1], [0, 0, 1, 1], [], []>} : vector<8x4xf32>, vector<4x1xf32>, vector<8x1xf32> -> vector<8x1xf32>
    %12 = arith.negf %11 : vector<8x1xf32>
    %13 = math.exp %12 : vector<8x1xf32>
    %cst_10 = arith.constant 1.000000e+00 : f32
    %14 = vector.broadcast %cst_10 : f32 to vector<8x1xf32>
    %15 = arith.addf %14, %13 : vector<8x1xf32>
    %16 = arith.divf %14, %15 : vector<8x1xf32>
    %c0_11 = arith.constant 0 : index
    %c0_12 = arith.constant 0 : index
    %17 = vector.load %arg4[%c0_11, %c0_12] : memref<8x8xf32, #tpu.memory_space<vmem>>, vector<8x8xf32>
    %cst_13 = arith.constant dense<0.000000e+00> : vector<8x256xf32>
    %18 = tpu.matmul %17, %1, %cst_13 {dimension_numbers = #tpu.dot_dimension_numbers<[1], [0], [0], [1], [0, 0, 1, 1], [], []>} : vector<8x8xf32>, vector<8x256xf32>, vector<8x256xf32> -> vector<8x256xf32>
    %19 = arith.negf %18 : vector<8x256xf32>
    %20 = math.exp %19 : vector<8x256xf32>
    %cst_14 = arith.constant 1.000000e+00 : f32
    %21 = vector.broadcast %cst_14 : f32 to vector<8x256xf32>
    %22 = arith.addf %21, %20 : vector<8x256xf32>
    %23 = arith.divf %21, %22 : vector<8x256xf32>
    %24 = vector.broadcast %16 : vector<8x1xf32> to vector<8x256xf32>
    %25 = arith.addf %24, %23 : vector<8x256xf32>
    %26 = arith.mulf %1, %25 : vector<8x256xf32>
    %c0_15 = arith.constant 0 : index
    %c0_16 = arith.constant 0 : index
    %c0_17 = arith.constant 0 : index
    %27 = vector.load %arg5[%c0_15, %c0_16, %c0_17] : memref<1x8x256xf32, #tpu.memory_space<vmem>>, vector<1x8x256xf32>
    %28 = vector.shape_cast %27 : vector<1x8x256xf32> to vector<8x256xf32>
    %29 = vector.shape_cast %26 : vector<8x256xf32> to vector<1x8x256xf32>
    tpu.vector_store %arg5[%c0_15, %c0_16, %c0_17], %29 {strides = array<i32>} : memref<1x8x256xf32, #tpu.memory_space<vmem>>, vector<1x8x256xf32>,
    return
  }
  func.func @transform_0(%arg0: i32) -> (i32, i32, i32) {
    %c0_i32 = arith.constant 0 : i32
    %c0_i32_0 = arith.constant 0 : i32
    %c0_i32_1 = arith.constant 0 : i32
    return %arg0, %c0_i32, %c0_i32_0 : i32, i32, i32
  }
  func.func @transform_1(%arg0: i32) -> (i32, i32) {
    %c0_i32 = arith.constant 0 : i32
    %c0_i32_0 = arith.constant 0 : i32
    %c0_i32_1 = arith.constant 0 : i32
    return %c0_i32, %c0_i32_0 : i32, i32
  }
  func.func @transform_2(%arg0: i32) -> (i32, i32) {
    %c0_i32 = arith.constant 0 : i32
    %c0_i32_0 = arith.constant 0 : i32
    %c0_i32_1 = arith.constant 0 : i32
    return %c0_i32, %c0_i32_0 : i32, i32
  }
  func.func @transform_3(%arg0: i32) -> (i32, i32) {
    %c0_i32 = arith.constant 0 : i32
    %c0_i32_0 = arith.constant 0 : i32
    %c0_i32_1 = arith.constant 0 : i32
    return %c0_i32, %c0_i32_0 : i32, i32
  }
  func.func @transform_4(%arg0: i32) -> (i32, i32, i32) {
    %c0_i32 = arith.constant 0 : i32
    %c0_i32_0 = arith.constant 0 : i32
    %c0_i32_1 = arith.constant 0 : i32
    return %arg0, %c0_i32, %c0_i32_0 : i32, i32, i32
  }
}

</mosaic_0001>

<bundles_post_ra>
// kernel: tpu_custom_call.1
= control target key start
LH: loop header
LB: loop body
LE: loop exit
PB: predicated region body
PF: predicated region fallthrough
CT: control target
= control target key end

     0   :  { %9 = vsyncpa [#allocation3], 0  ;;  %s460_s0 = inlined_call_operand.hbm [shape: f32[1,8,256], index: 0, kind: input, shape index: {}]   ;;  %s461_s1 = inlined_call_operand.vmem [shape: f32[4,8], index: 1, kind: input, shape index: {}]   ;;  %s462_s2 = inlined_call_operand.vmem [shape: f32[8,4], index: 2, kind: input, shape index: {}]   ;;  %s463_s3 = inlined_call_operand.vmem [shape: f32[8,8], index: 3, kind: input, shape index: {}]   ;;  %s464_s4 = inlined_call_operand.hbm [shape: f32[1,8,256], index: 4, kind: output, shape index: {}]  }
   0x1   :  { %10 = vsyncpa [#allocation4], 0  ;;  %s397_s15 = smov [#allocation2]   ;;  %s349_s19 = scalar_lea.hbm %s460_s0, 256 }
   0x2   :  { %s17_s16 = sshll.u32 %s397_s15, 4  ;;  %p350_p0 = scmp.ne.s32.totalorder %s460_s0, %s349_s19  ;;  %s18_s16 = int_to_ptr.vmem [resolvable:$true] %s17_s16 }
   0x3   :  { %p353_p1 = scmp.lt.u32.totalorder %s349_s19, %s460_s0 }
   0x5   :  { %p355_p2 = pnand %p353_p1, %p350_p0 }
   0x7   :  { %358 = shalt.err (!%p355_p2)
}
   0x8   :  { %s359_s24 = scalar_lea.vmem %s18_s16, 256  ;;  %p364_p4 = scmp.lt.s32.totalorder %s18_s16, %s18_s16 }
   0x9   :  { %p360_p3 = scmp.ne.s32.totalorder %s18_s16, %s359_s24  ;;  %p365_p5 = scmp.lt.s32.totalorder %s359_s24, %s359_s24 }
   0xb   :  { %p366_p6 = por %p365_p5, %p364_p4 }
   0xd   :  { %p367_p7 = pnand %p366_p6, %p360_p3 }
   0xf   :  { %370 = shalt.err (!%p367_p7)
}
  0x10   :  { %20 = dma.hbm_to_vmem [thread:$0]  %s460_s0, 256, %s18_s16, [#allocation3]  }
  0x11   :  { %393 = dma.done.wait [#allocation3], 256  }
  0x12   :  { %394 = vsyncadd [#allocation3], 4294967040  ;;  %v30_v0 = vld [vmem:[#allocation2] sm:$0xff]  ;;  %v31_v1 = vld [vmem:[#allocation2 + $0x8] sm:$0xff]  ;;  %v398_v3 = vmov 0.0   ;;  %vm399_vm0 = vmmov 0  }
  0x13   :  { %v32_v2 = vadd.f32 %v31_v1, %v30_v0  ;;  %321 = vmatprep.subr.mxu0 %v398_v3  ;;  %326 = vmatprep.subr.mxu1 %v398_v3  ;;  %v36_v6 = vld [vmem:[%s461_s1] sm:$0xf]  ;;  %vm37_vm1 = vcmask 64512   ;;  %vm117_vm2 = vcmask 1043456   ;;  %vm113_vm3 = vcmask 31744   ;;  %s401_s1 = smov [#allocation5]  }
  0x14   :  { %323 = vmatprep.mubr.msk.f32.mxu0 %vm399_vm0, %v398_v3  ;;  %328 = vmatprep.mubr.msk.f32.mxu1 %vm399_vm0, %v398_v3  ;;  %v197_v7 = vld [vmem:[%s463_s3] sm:$0xff]  ;;  %v400_v12 = vmov 0  }
  0x15   :  { %33 = vadd.xlane.f32.xlu0 %v32_v2  ;;  %v112_v11 = vld [vmem:[%s462_s2] sm:$0xff]  ;;  %s301_s2 = sshll.u32 %s401_s1, 4  ;;  %s302_s2 = int_to_ptr.vmem [resolvable:$true] %s301_s2 }
  0x16   :  { %336 = vset.pattern.permute.xlu0 %v400_v12  ;;  %s371_s3 = scalar_lea.vmem %s302_s2, 256  ;;  %p376_p9 = scmp.lt.s32.totalorder %s302_s2, %s302_s2 }
  0x17   :  { %p372_p8 = scmp.ne.s32.totalorder %s302_s2, %s371_s3  ;;  %p377_p10 = scmp.lt.s32.totalorder %s371_s3, %s371_s3 }
  0x19   :  { %p378_p11 = por %p377_p10, %p376_p9 }
  0x1b   :  { %p379_p12 = pnand %p378_p11, %p372_p8 }
  0xa2   :  { %v34_v4 = vpop.xlane.xlu0 %33 }
  0xa3   :  { %v35_v5 = vmul.f32 0.00390625, %v34_v4 }
  0xa5   :  { %322 = vmatpush3.msra.mxu0 %v35_v5 }
  0xa6   :  { %324 = vmatmul.mubr.msk.f32.vlgmr.msra.gmra.mrb[0].mxu0 %vm37_vm1, %v36_v6  ;;  %201 = vmatprep.subr.mxu0 %v31_v1 }
  0xa7   :  { %202 = vmatpush1.msra.mxu0 %v30_v0  ;;  %265 = vmatprep.mubr.f32.mxu0 %v398_v3 }
  0xaa   :  { %314 = vmatmul.mubr.msk.f32.vlgmr.msra.gmra.mrb[2].mxu0 %vm37_vm1, %v197_v7 }
 0x179   :  { %v107_v8 = vpop.f32.mrb[0].mxu0 }
 0x17a   :  { %v111_v9 = vmax.f32 %v107_v8, 0.0  ;;  %v325_v10 = vpop.f32.mrb[1].mxu0 }
 0x17c   :  { %327 = vmatpush3.msk.msra.mxu1 %vm117_vm2, %v111_v9 }
 0x17d   :  { %329 = vmatmul.mubr.msk.f32.vlgmr.msra.gmra.mrb[0].mxu1 %vm113_vm3, %v112_v11  ;;  %v267_v13 = vpop.f32.mrb[2].mxu0 }
 0x17e   :  { %v269_v14 = vpop.f32.mrb[3].mxu0  ;;  %v315_v21 = vmul.f32 -1.442695, %v267_v13 }
 0x17f   :  { %v316_v22 = vmul.f32 -1.442695, %v269_v14 }
 0x250   :  { %v187_v15 = vpop.f32.mrb[0].mxu1 }
 0x251   :  { %v313_v16 = vmul.f32 -1.442695, %v187_v15  ;;  %v330_v17 = vpop.f32.mrb[1].mxu1 }
 0x253   :  { %337 = vpow2.f32 %v313_v16 }
 0x25d   :  { %v338_v18 = vpop.eup %337 }
 0x25e   :  { %v194_v19 = vadd.f32 1.0, %v338_v18 }
 0x260   :  { %339 = vrcp.f32 %v194_v19 }
 0x261   :  { %341 = vpow2.f32 %v315_v21 }
 0x262   :  { %343 = vpow2.f32 %v316_v22 }
 0x26a   :  { %v340_v20 = vpop.eup %339 }
 0x26b   :  { %286 = vperm.xlu0 %336, %v340_v20   ;;  %v342_v23 = vpop.eup %341 }
 0x26c   :  { %v344_v24 = vpop.eup %343  ;;  %v278_v25 = vadd.f32 1.0, %v342_v23 }
 0x26d   :  { %v279_v26 = vadd.f32 1.0, %v344_v24 }
 0x26e   :  { %345 = vrcp.f32 %v278_v25 }
 0x26f   :  { %347 = vrcp.f32 %v279_v26 }
 0x278   :  { %v346_v27 = vpop.eup %345 }
 0x279   :  { %v348_v28 = vpop.eup %347 }
 0x2ea   :  { %v287_v29 = vpop.permute.xlu0 %286 }
 0x2eb   :  { %v289_v30 = vadd.f32 %v346_v27, %v287_v29  ;;  %v290_v31 = vadd.f32 %v348_v28, %v287_v29 }
 0x2ed   :  { %v291_v32 = vmul.f32 %v289_v30, %v30_v0  ;;  %v292_v33 = vmul.f32 %v290_v31, %v31_v1 }
 0x2ef   :  { %293 = vst [vmem:[#allocation5] sm:$0xff] %v291_v32  ;;  %294 = vst [vmem:[#allocation5 + $0x8] sm:$0xff] %v292_v33 }
 0x2f0   :  { %382 = shalt.err (!%p379_p12)
}
 0x2f1   :  { %s383_s8 = scalar_lea.hbm %s464_s4, 256 }
 0x2f2   :  { %p384_p13 = scmp.ne.s32.totalorder %s464_s4, %s383_s8  ;;  %p387_p0 = scmp.lt.u32.totalorder %s383_s8, %s464_s4 }
 0x2f4   :  { %p389_p1 = pnand %p387_p0, %p384_p13 }
 0x2f6   :  { %392 = shalt.err (!%p389_p1)
}
 0x2f7   :  { %304 = dma.vmem_to_hbm [thread:$0]  %s302_s2, 256, %s464_s4, [#allocation4]  }
 0x2f8   :  { %395 = dma.done.wait [#allocation4], 256  }
 0x2f9   :  { %396 = vsyncadd [#allocation4], 4294967040 }
 0x2fa   :  { %308 = vsyncpa [#allocation3], 1 }
 0x2fb   :  { %309 = vsyncpa [#allocation4], 1 }

</bundles_post_ra>
